<compile_context>
chip_gen: v7x
topology: tpu7x:2x2x1
jax: 0.10.0
libtpu: 0.0.40
codegen_flags: <defaults>
</compile_context>

<pallas_src>
import functools

import jax
import jax.numpy as jnp
from jax.experimental import pallas as pl
from jax.experimental.pallas import tpu as pltpu


def _round_up(a, b):
    return (a + b - 1) // b * b


def _patch_embed_kernel(p_ref, w_ref, b_ref, o_ref):
    # p_ref: [TM, Kp]  patches tile
    # w_ref: [TE, Kp]  weight tile (PyTorch [E, K] layout; contract on K)
    # b_ref: [1,  TE]  bias tile
    # o_ref: [TM, TE]
    acc = jax.lax.dot_general(
        p_ref[...],
        w_ref[...],
        dimension_numbers=(((1,), (1,)), ((), ())),
        preferred_element_type=jnp.float32,
    )
    o_ref[...] = (acc + b_ref[...].astype(jnp.float32)).astype(o_ref.dtype)


@functools.partial(jax.jit, static_argnames=("patch_size",))
def patch_embed(x, weight, bias, patch_size):
    """Equivalent of PatchEmbed.forward.

    x:      [B, C, H, W]   (NCHW, like PyTorch)
    weight: [E, C, ph, pw] (PyTorch Conv2d weight layout)
    bias:   [E]
    returns [B, num_patches, E]
    """
    B, C, H, W = x.shape
    ph, pw = patch_size
    E = weight.shape[0]
    Hp, Wp = H // ph, W // pw
    num_patches = Hp * Wp

    # --- im2col (single fused XLA copy under jit) ---------------------------
    # Conv2d(kernel=stride=patch) reduces over (C, kh, kw); flatten each patch
    # in that order so it matches weight.reshape(E, C*ph*pw).
    xp = x.reshape(B, C, Hp, ph, Wp, pw)
    xp = jnp.transpose(xp, (0, 2, 4, 1, 3, 5))           # [B, Hp, Wp, C, ph, pw]
    patches = xp.reshape(B * num_patches, C * ph * pw)   # [M, K]
    M, K = patches.shape

    # --- lane/MXU-aligned padded shapes and tiles ---------------------------
    Kp = _round_up(K, 128)
    Ep = _round_up(E, 128)
    TE = 256 if Ep % 256 == 0 else 128   # 256 matches v6e/v7x MXU; 128 fine on v5e
    TM = min(256, _round_up(M, 8))
    Mp = _round_up(M, TM)

    patches_p = jnp.pad(patches, ((0, Mp - M), (0, Kp - K)))
    w_mat = jnp.pad(weight.reshape(E, K), ((0, Ep - E), (0, Kp - K)))
    b_mat = jnp.pad(bias, (0, Ep - E)).reshape(1, Ep)

    grid = (Mp // TM, Ep // TE)
    bpe = patches_p.dtype.itemsize
    cost = pl.CostEstimate(
        flops=2 * Mp * Kp * Ep,
        transcendentals=0,
        bytes_accessed=bpe * (Mp * Kp + Ep * Kp + Mp * Ep + Ep),
    )

    out = pl.pallas_call(
        _patch_embed_kernel,
        out_shape=jax.ShapeDtypeStruct((Mp, Ep), x.dtype),
        grid_spec=pltpu.PrefetchScalarGridSpec(
            num_scalar_prefetch=0,
            grid=grid,
            in_specs=[
                pl.BlockSpec((TM, Kp), lambda i, j: (i, 0)),
                pl.BlockSpec((TE, Kp), lambda i, j: (j, 0)),
                pl.BlockSpec((1, TE), lambda i, j: (0, j)),
            ],
            out_specs=pl.BlockSpec((TM, TE), lambda i, j: (i, j)),
        ),
        compiler_params=pltpu.CompilerParams(
            dimension_semantics=("parallel", "parallel"),
            vmem_limit_bytes=32 * 1024 * 1024,
        ),
        cost_estimate=cost,
    )(patches_p, w_mat, b_mat)

    return out[:M, :E].reshape(B, num_patches, E)


def _reference(x, weight, bias, patch_size):
    # Pure-JAX reference of Conv2d(stride=kernel=patch) + flatten(2).transpose(1,2)
    ph, pw = patch_size
    y = jax.lax.conv_general_dilated(
        x, weight, window_strides=(ph, pw), padding="VALID",
        dimension_numbers=("NCHW", "OIHW", "NCHW"),
    ) + bias.reshape(1, -1, 1, 1)
    B, E, Hp, Wp = y.shape
    return jnp.transpose(y.reshape(B, E, Hp * Wp), (0, 2, 1))


if __name__ == "__main__":
    # Small shapes consistent with the module:
    # batch=2, in_channels=4, img=16x16, patch=4x4, embed_dim=32
    img_size = (16, 16)
    patch_size = (4, 4)
    in_channels = 4
    embed_dim = 32
    B = 2

    key = jax.random.PRNGKey(0)
    kx, kw, kb = jax.random.split(key, 3)

    x = jax.random.normal(kx, (B, in_channels, *img_size), dtype=jnp.float32)
    weight = jax.random.normal(
        kw, (embed_dim, in_channels, *patch_size), dtype=jnp.float32) * 0.05
    bias = jax.random.normal(kb, (embed_dim,), dtype=jnp.float32) * 0.05

    out = patch_embed(x, weight, bias, patch_size=patch_size)
    out = jax.block_until_ready(out)

    ref = _reference(x, weight, bias, patch_size)
    assert out.shape == (B, (img_size[0] // patch_size[0]) *
                         (img_size[1] // patch_size[1]), embed_dim)
    assert jnp.allclose(out, ref, atol=1e-4, rtol=1e-4)

    print("KERNEL_OK")
</pallas_src>

<mosaic_0001>
module attributes {stable_mosaic.version = 11 : i64} {
  func.func @_patch_embed_kernel(%arg0: i32, %arg1: i32, %arg2: memref<32x128xf32, #tpu.memory_space<vmem>>, %arg3: memref<128x128xf32, #tpu.memory_space<vmem>>, %arg4: memref<1x128xf32, #tpu.memory_space<vmem>>, %arg5: memref<32x128xf32, #tpu.memory_space<vmem>>) attributes {dimension_semantics = [#tpu.dimension_semantics<parallel>, #tpu.dimension_semantics<parallel>], iteration_bounds = array<i64: 1, 1>, scalar_prefetch = 0 : i64, scratch_operands = 0 : i64, tpu.core_type = #tpu.core_type<tc>, window_params = [{transform_indices = @transform_0, window_bounds = array<i64: 32, 128>}, {transform_indices = @transform_1, window_bounds = array<i64: 128, 128>}, {transform_indices = @transform_2, window_bounds = array<i64: 1, 128>}, {transform_indices = @transform_3, window_bounds = array<i64: 32, 128>}]} {
    %c0 = arith.constant 0 : index
    %c0_0 = arith.constant 0 : index
    %0 = vector.load %arg2[%c0, %c0_0] : memref<32x128xf32, #tpu.memory_space<vmem>>, vector<32x128xf32>
    %c0_1 = arith.constant 0 : index
    %c0_2 = arith.constant 0 : index
    %1 = vector.load %arg3[%c0_1, %c0_2] : memref<128x128xf32, #tpu.memory_space<vmem>>, vector<128x128xf32>
    %cst = arith.constant dense<0.000000e+00> : vector<32x128xf32>
    %2 = tpu.matmul %0, %1, %cst {dimension_numbers = #tpu.dot_dimension_numbers<[1], [1], [0], [0], [0, 0, 1, 0], [], []>} : vector<32x128xf32>, vector<128x128xf32>, vector<32x128xf32> -> vector<32x128xf32>
    %c0_3 = arith.constant 0 : index
    %c0_4 = arith.constant 0 : index
    %3 = vector.load %arg4[%c0_3, %c0_4] : memref<1x128xf32, #tpu.memory_space<vmem>>, vector<1x128xf32>
    %4 = vector.broadcast %3 : vector<1x128xf32> to vector<32x128xf32>
    %5 = arith.addf %2, %4 : vector<32x128xf32>
    %c0_5 = arith.constant 0 : index
    %c0_6 = arith.constant 0 : index
    %6 = vector.load %arg5[%c0_5, %c0_6] : memref<32x128xf32, #tpu.memory_space<vmem>>, vector<32x128xf32>
    tpu.vector_store %arg5[%c0_5, %c0_6], %5 {strides = array<i32>} : memref<32x128xf32, #tpu.memory_space<vmem>>, vector<32x128xf32>,
    return
  }
  func.func @transform_0(%arg0: i32, %arg1: i32) -> (i32, i32) {
    %c0_i32 = arith.constant 0 : i32
    %c0_i32_0 = arith.constant 0 : i32
    return %arg0, %c0_i32 : i32, i32
  }
  func.func @transform_1(%arg0: i32, %arg1: i32) -> (i32, i32) {
    %c0_i32 = arith.constant 0 : i32
    %c0_i32_0 = arith.constant 0 : i32
    return %arg1, %c0_i32 : i32, i32
  }
  func.func @transform_2(%arg0: i32, %arg1: i32) -> (i32, i32) {
    %c0_i32 = arith.constant 0 : i32
    %c0_i32_0 = arith.constant 0 : i32
    return %c0_i32, %arg1 : i32, i32
  }
  func.func @transform_3(%arg0: i32, %arg1: i32) -> (i32, i32) {
    %c0_i32 = arith.constant 0 : i32
    return %arg0, %arg1 : i32, i32
  }
}

</mosaic_0001>

<bundles_post_ra>
// kernel: patch_embed.1
= control target key start
LH: loop header
LB: loop body
LE: loop exit
PB: predicated region body
PF: predicated region fallthrough
CT: control target
= control target key end

     0   :  { %s379_s0 = inlined_call_operand.vmem [shape: f32[32,128], index: 0, kind: input, shape index: {}]   ;;  %s380_s1 = inlined_call_operand.vmem [shape: f32[128,128], index: 1, kind: input, shape index: {}]   ;;  %s381_s2 = inlined_call_operand.vmem [shape: f32[1,128], index: 2, kind: input, shape index: {}]   ;;  %s382_s3 = inlined_call_operand.hbm [shape: f32[32,128], index: 3, kind: output, shape index: {}]  }
   0x1   :  { %v19_v0 = vld [vmem:[%s380_s1] sm:$0xff]  ;;  %v20_v1 = vld [vmem:[%s380_s1 + $0x8] sm:$0xff]  ;;  %v21_v2 = vld [vmem:[%s380_s1 + $0x10] sm:$0xff] }
   0x2   :  { %v206_v3 = vpack.c.bf16 %v20_v1, %v19_v0  ;;  %v22_v4 = vld [vmem:[%s380_s1 + $0x18] sm:$0xff]  ;;  %v15_v6 = vld [vmem:[%s379_s0] sm:$0xff]  ;;  %v17_v7 = vld [vmem:[%s379_s0 + $0x10] sm:$0xff] }
   0x3   :  { %v210_v5 = vpack.c.bf16 %v22_v4, %v21_v2  ;;  %v23_v8 = vld [vmem:[%s380_s1 + $0x20] sm:$0xff]  ;;  %v24_v9 = vld [vmem:[%s380_s1 + $0x28] sm:$0xff]  ;;  %200 = vmatprep.mubr.f32.mxu0 %v15_v6  ;;  %203 = vmatprep.mubr.f32.mxu1 %v17_v7 }
   0x4   :  { %207 = vmatprep.subr.bf16.mxu0 %v206_v3  ;;  %238 = vmatprep.subr.bf16.mxu1 %v206_v3 }
   0x5   :  { %209 = vmatpush3.bf16.xpose.msra.mxu0 %v206_v3  ;;  %246 = vmatpush3.bf16.xpose.msra.mxu1 %v206_v3 }
   0x6   :  { %211 = vmatprep.subr.bf16.mxu0 %v210_v5  ;;  %239 = vmatprep.subr.bf16.mxu1 %v210_v5 }
   0x7   :  { %8 = vsyncpa [#allocation3], 0  ;;  %v214_v10 = vpack.c.bf16 %v24_v9, %v23_v8  ;;  %v25_v11 = vld [vmem:[%s380_s1 + $0x30] sm:$0xff]  ;;  %v26_v12 = vld [vmem:[%s380_s1 + $0x38] sm:$0xff] }
   0x8   :  { %v218_v13 = vpack.c.bf16 %v26_v12, %v25_v11  ;;  %v27_v14 = vld [vmem:[%s380_s1 + $0x40] sm:$0xff]  ;;  %v28_v15 = vld [vmem:[%s380_s1 + $0x48] sm:$0xff]  ;;  %v29_v17 = vld [vmem:[%s380_s1 + $0x50] sm:$0xff] }
   0x9   :  { %v222_v16 = vpack.c.bf16 %v28_v15, %v27_v14  ;;  %v30_v18 = vld [vmem:[%s380_s1 + $0x58] sm:$0xff]  ;;  %v31_v20 = vld [vmem:[%s380_s1 + $0x60] sm:$0xff]  ;;  %v32_v21 = vld [vmem:[%s380_s1 + $0x68] sm:$0xff] }
   0xa   :  { %v226_v19 = vpack.c.bf16 %v30_v18, %v29_v17  ;;  %v230_v22 = vpack.c.bf16 %v32_v21, %v31_v20  ;;  %v33_v23 = vld [vmem:[%s380_s1 + $0x70] sm:$0xff]  ;;  %v34_v24 = vld [vmem:[%s380_s1 + $0x78] sm:$0xff]  ;;  %v16_v26 = vld [vmem:[%s379_s0 + $0x8] sm:$0xff]  ;;  %s281_s1 = smov [#allocation2]  }
   0xb   :  { %v234_v25 = vpack.c.bf16 %v34_v24, %v33_v23  ;;  %v18_v27 = vld [vmem:[%s379_s0 + $0x18] sm:$0xff]  ;;  %v147_v28 = vld [vmem:[%s381_s2] ss:$0 sm:$0xff]  ;;  %s136_s27 = sshll.u32 %s281_s1, 4  ;;  %s137_s27 = int_to_ptr.vmem [resolvable:$true] %s136_s27 }
   0xc   :  { %s257_s0 = scalar_lea.vmem %s137_s27, 512  ;;  %p262_p1 = scmp.lt.s32.totalorder %s137_s27, %s137_s27 }
   0xd   :  { %213 = vmatpush3.bf16.xpose.msra.mxu0 %v210_v5  ;;  %247 = vmatpush3.bf16.xpose.msra.mxu1 %v210_v5  ;;  %p258_p0 = scmp.ne.s32.totalorder %s137_s27, %s257_s0  ;;  %p263_p2 = scmp.lt.s32.totalorder %s257_s0, %s257_s0 }
   0xe   :  { %215 = vmatprep.subr.bf16.mxu0 %v214_v10  ;;  %240 = vmatprep.subr.bf16.mxu1 %v214_v10 }
   0xf   :  { %p264_p3 = por %p263_p2, %p262_p1 }
  0x11   :  { %p265_p4 = pnand %p264_p3, %p258_p0 }
  0x15   :  { %217 = vmatpush3.bf16.xpose.msra.mxu0 %v214_v10  ;;  %248 = vmatpush3.bf16.xpose.msra.mxu1 %v214_v10 }
  0x16   :  { %219 = vmatprep.subr.bf16.mxu0 %v218_v13  ;;  %241 = vmatprep.subr.bf16.mxu1 %v218_v13 }
  0x1d   :  { %221 = vmatpush3.bf16.xpose.msra.mxu0 %v218_v13  ;;  %249 = vmatpush3.bf16.xpose.msra.mxu1 %v218_v13 }
  0x1e   :  { %223 = vmatprep.subr.bf16.mxu0 %v222_v16  ;;  %242 = vmatprep.subr.bf16.mxu1 %v222_v16 }
  0x25   :  { %225 = vmatpush3.bf16.xpose.msra.mxu0 %v222_v16  ;;  %250 = vmatpush3.bf16.xpose.msra.mxu1 %v222_v16 }
  0x26   :  { %227 = vmatprep.subr.bf16.mxu0 %v226_v19  ;;  %243 = vmatprep.subr.bf16.mxu1 %v226_v19 }
  0x2d   :  { %229 = vmatpush3.bf16.xpose.msra.mxu0 %v226_v19  ;;  %251 = vmatpush3.bf16.xpose.msra.mxu1 %v226_v19 }
  0x2e   :  { %231 = vmatprep.subr.bf16.mxu0 %v230_v22  ;;  %244 = vmatprep.subr.bf16.mxu1 %v230_v22 }
  0x35   :  { %233 = vmatpush3.bf16.xpose.msra.mxu0 %v230_v22  ;;  %252 = vmatpush3.bf16.xpose.msra.mxu1 %v230_v22 }
  0x36   :  { %235 = vmatprep.subr.bf16.mxu0 %v234_v25  ;;  %245 = vmatprep.subr.bf16.mxu1 %v234_v25 }
  0x3d   :  { %237 = vmatpush3.bf16.xpose.msra.mxu0 %v234_v25  ;;  %253 = vmatpush3.bf16.xpose.msra.mxu1 %v234_v25 }
  0x44   :  { %201 = vmatmul.mubr.f32.vlgmr.msra.gmra.mrb[0].mxu0 %v16_v26  ;;  %204 = vmatmul.mubr.f32.vlgmr.msra.gmra.mrb[0].mxu1 %v18_v27 }
 0x117   :  { %v202_v29 = vpop.f32.mrb[0].mxu0  ;;  %v205_v30 = vpop.f32.mrb[0].mxu1 }
 0x118   :  { %v114_v31 = vadd.f32 %v202_v29, %v147_v28  ;;  %v124_v32 = vadd.f32 %v205_v30, %v147_v28  ;;  %v108_v33 = vpop.f32.mrb[1].mxu0  ;;  %v118_v34 = vpop.f32.mrb[1].mxu1 }
 0x119   :  { %v109_v35 = vadd.f32 %v147_v28, %v108_v33  ;;  %v119_v36 = vadd.f32 %v147_v28, %v118_v34 }
 0x11a   :  { %128 = vst [vmem:[#allocation2 + $0x8] sm:$0xff] %v114_v31  ;;  %130 = vst [vmem:[#allocation2 + $0x18] sm:$0xff] %v124_v32 }
 0x11b   :  { %127 = vst [vmem:[#allocation2] sm:$0xff] %v109_v35  ;;  %129 = vst [vmem:[#allocation2 + $0x10] sm:$0xff] %v119_v36 }
 0x11c   :  { %268 = shalt.err (!%p265_p4)
}
 0x11d   :  { %s269_s29 = scalar_lea.hbm %s382_s3, 512 }
 0x11e   :  { %p270_p5 = scmp.ne.s32.totalorder %s382_s3, %s269_s29  ;;  %p273_p6 = scmp.lt.u32.totalorder %s269_s29, %s382_s3 }
 0x120   :  { %p275_p7 = pnand %p273_p6, %p270_p5 }
 0x122   :  { %278 = shalt.err (!%p275_p7)
}
 0x123   :  { %s282_s7 = smov 128   ;;  %s283_s8 = smov 8  }
 0x124   :  { %142 = dma.vmem_to_hbm [thread:$0]  %s137_s27, 512, %s382_s3, [#allocation3], %s282_s7, %s282_s7, %s283_s8  }
 0x125   :  { %279 = dma.done.wait [#allocation3], 512  }
 0x126   :  { %280 = vsyncadd [#allocation3], 4294966784 }
 0x127   :  { %146 = vsyncpa [#allocation3], 1 }

</bundles_post_ra>
